<compile_context>
chip_gen: v6e
topology: v6e:2x2x1
jax: 0.10.0
libtpu: 0.0.40
codegen_flags: <defaults>
</compile_context>

<pallas_src>
import math

import jax
import jax.numpy as jnp
from jax.experimental import pallas as pl
from jax.experimental.pallas import tpu as pltpu

_C = math.sqrt(2.0 / math.pi)          # sqrt(2/pi)
_CK = _C * 0.044715                    # sqrt(2/pi) * 0.044715 (folded constant)


def _compute_dtype(dtype) -> jnp.dtype:
    # Sub-32-bit inputs (bf16/fp16/8-bit) are computed in f32.
    return jnp.float32 if jnp.dtype(dtype).itemsize < 4 else jnp.dtype(dtype)


def _gelu_kernel(x_ref, o_ref):
    cdt = _compute_dtype(x_ref.dtype)
    x = x_ref[...].astype(cdt)
    c = jnp.asarray(_C, dtype=cdt)
    ck = jnp.asarray(_CK, dtype=cdt)
    half = jnp.asarray(0.5, dtype=cdt)
    # 0.5*x*(1 + tanh(sqrt(2/pi)*(x + 0.044715*x^3)))
    #   = hx + hx*tanh(x*(c + ck*x^2)),  hx = 0.5*x   (Horner, fewer VALU ops)
    inner = x * (c + ck * (x * x))      # tanh input
    hx = half * x
    o_ref[...] = (hx + hx * jnp.tanh(inner)).astype(o_ref.dtype)


def _gelu_jnp(x: jax.Array) -> jax.Array:
    """Plain-JAX GeLU for the tiny unaligned tail (same math as the kernel)."""
    cdt = _compute_dtype(x.dtype)
    xf = x.astype(cdt)
    inner = xf * (jnp.asarray(_C, cdt) + jnp.asarray(_CK, cdt) * (xf * xf))
    hx = jnp.asarray(0.5, cdt) * xf
    return (hx + hx * jnp.tanh(inner)).astype(x.dtype)


def _vmem_capacity_bytes() -> int:
    try:
        return int(pltpu.get_tpu_info().vmem_capacity_bytes)
    except Exception:
        return 64 * 1024 * 1024  # conservative (v7x per-TC)


def gelu(x: jax.Array) -> jax.Array:
    """Tanh-approx GeLU matching the PyTorch module's forward."""
    orig_shape = x.shape
    dtype = x.dtype
    itemsize = jnp.dtype(dtype).itemsize

    n = 1
    for d in orig_shape:
        n *= d
    if n == 0:
        return x

    flat = x.reshape(-1)

    # Aligned prefix handled by the kernel; <=127-element tail in plain jnp
    # (no pad+slice round trip through HBM).
    n_main = (n // 128) * 128
    if n_main == 0:
        return _gelu_jnp(flat).reshape(orig_shape)

    # Lane-dense width: largest of these multiples of 128 dividing the prefix.
    width = 128
    for w in (1024, 512, 256):
        if n_main % w == 0:
            width = w
            break

    rows = n_main // width
    main = flat if n_main == n else flat[:n_main]
    x2d = main.reshape(rows, width)

    # Sublane packing quantum: 8 (f32) / 16 (bf16,fp16) / 32 (1-byte dtypes).
    sublane = max(8, 32 // max(itemsize, 1))

    # Generation-aware block sizing: ~VMEM/8 per tile (capped 4..12 MiB), so
    # 2x double-buffered (in+out) tiles use ~half of VMEM at most.
    vmem_cap = _vmem_capacity_bytes()
    target_block_bytes = min(12 * 1024 * 1024,
                             max(4 * 1024 * 1024, vmem_cap // 8))
    vmem_limit_bytes = min(vmem_cap * 3 // 4,
                           4 * target_block_bytes + 8 * 1024 * 1024)

    row_bytes = width * itemsize
    total_main_bytes = n_main * itemsize

    if total_main_bytes <= 2 * 1024 * 1024:
        # Genuinely tiny: one block covering the whole array (block dims equal
        # the full array dims, so the (8,128) divisibility exemption applies).
        tr = rows
    else:
        ideal_tr = max(sublane, (target_block_bytes // row_bytes) // sublane * sublane)
        # Keep >= 4 blocks so the DMA pipeline overlaps and both v7x cores
        # get work even for mid-size tensors.
        quarter = max(sublane, (rows // 4) // sublane * sublane)
        tr = max(sublane, min(ideal_tr, quarter))
        # Even block count -> balanced split across v7x's two TensorCores.
        while tr > sublane and pl.cdiv(rows, tr) % 2 != 0:
            tr -= sublane

    grid = (pl.cdiv(rows, tr),)

    cost = pl.CostEstimate(
        flops=8 * n_main,            # a handful of mul/add per element
        transcendentals=n_main,      # one tanh per element
        bytes_accessed=2 * n_main * itemsize,
    )

    out2d = pl.pallas_call(
        _gelu_kernel,
        out_shape=jax.ShapeDtypeStruct((rows, width), dtype),
        grid_spec=pl.GridSpec(
            grid=grid,
            in_specs=[pl.BlockSpec((tr, width), lambda i: (i, 0))],
            out_specs=pl.BlockSpec((tr, width), lambda i: (i, 0)),
        ),
        compiler_params=pltpu.CompilerParams(
            # Independent row blocks -> shard across v7x's 2 TensorCores.
            dimension_semantics=("parallel",),
            vmem_limit_bytes=vmem_limit_bytes,
        ),
        cost_estimate=cost,
    )(x2d)

    out_main = out2d.reshape(-1)
    if n_main == n:
        out_flat = out_main
    else:
        out_flat = jnp.concatenate([out_main, _gelu_jnp(flat[n_main:])])
    return out_flat.reshape(orig_shape)


def _ref_gelu(x):
    xf = x.astype(jnp.float32)
    c = math.sqrt(2.0 / math.pi)
    return (0.5 * xf * (1.0 + jnp.tanh(c * (xf + 0.044715 * xf**3)))).astype(x.dtype)


if __name__ == "__main__":
    key = jax.random.PRNGKey(0)

    # Small GPT-like shape: batch=2, seq=8, hidden=32.
    x = jax.random.normal(key, (2, 8, 32), dtype=jnp.float32)
    y = jax.block_until_ready(gelu(x))
    assert y.shape == x.shape and y.dtype == x.dtype
    assert jnp.allclose(y, _ref_gelu(x), atol=1e-6, rtol=1e-6)

    # Larger shape exercising the multi-block (>=4 even blocks) pipelined path.
    xb = jax.random.normal(jax.random.PRNGKey(1), (4, 1024, 1024), dtype=jnp.float32)
    yb = jax.block_until_ready(gelu(xb))
    assert jnp.allclose(yb, _ref_gelu(xb), atol=1e-5, rtol=1e-5)

    # bf16 input: kernel computes in f32 and casts back at the store.
    xh = jax.random.normal(jax.random.PRNGKey(2), (2, 128, 768), dtype=jnp.bfloat16)
    yh = jax.block_until_ready(gelu(xh))
    assert yh.dtype == jnp.bfloat16
    assert jnp.allclose(yh.astype(jnp.float32),
                        _ref_gelu(xh).astype(jnp.float32), atol=2e-2, rtol=2e-2)

    # Non-128-multiple element count: aligned prefix via kernel + jnp tail.
    xt = jax.random.normal(jax.random.PRNGKey(3), (5, 1000), dtype=jnp.float32)
    yt = jax.block_until_ready(gelu(xt))
    assert jnp.allclose(yt, _ref_gelu(xt), atol=1e-6, rtol=1e-6)

    print("KERNEL_OK")
</pallas_src>

<mosaic_0001>
module attributes {stable_mosaic.version = 11 : i64} {
  func.func @_gelu_kernel(%arg0: i32, %arg1: memref<1x512xf32, #tpu.memory_space<vmem>>, %arg2: memref<1x512xf32, #tpu.memory_space<vmem>>) attributes {dimension_semantics = [#tpu.dimension_semantics<parallel>], iteration_bounds = array<i64: 1>, scalar_prefetch = 0 : i64, scratch_operands = 0 : i64, tpu.core_type = #tpu.core_type<tc>, window_params = [{transform_indices = @transform_0, window_bounds = array<i64: 1, 512>}, {transform_indices = @transform_1, window_bounds = array<i64: 1, 512>}]} {
    %c0 = arith.constant 0 : index
    %c0_0 = arith.constant 0 : index
    %0 = vector.load %arg1[%c0, %c0_0] : memref<1x512xf32, #tpu.memory_space<vmem>>, vector<1x512xf32>
    %1 = arith.mulf %0, %0 : vector<1x512xf32>
    %cst = arith.constant 0.0356774069 : f32
    %2 = vector.broadcast %cst : f32 to vector<1x512xf32>
    %3 = arith.mulf %2, %1 : vector<1x512xf32>
    %cst_1 = arith.constant 0.797884583 : f32
    %4 = vector.broadcast %cst_1 : f32 to vector<1x512xf32>
    %5 = arith.addf %4, %3 : vector<1x512xf32>
    %6 = arith.mulf %0, %5 : vector<1x512xf32>
    %cst_2 = arith.constant 5.000000e-01 : f32
    %7 = vector.broadcast %cst_2 : f32 to vector<1x512xf32>
    %8 = arith.mulf %7, %0 : vector<1x512xf32>
    %9 = math.tanh %6 : vector<1x512xf32>
    %10 = arith.mulf %8, %9 : vector<1x512xf32>
    %11 = arith.addf %8, %10 : vector<1x512xf32>
    %c0_3 = arith.constant 0 : index
    %c0_4 = arith.constant 0 : index
    %12 = vector.load %arg2[%c0_3, %c0_4] : memref<1x512xf32, #tpu.memory_space<vmem>>, vector<1x512xf32>
    tpu.vector_store %arg2[%c0_3, %c0_4], %11 {strides = array<i32>} : memref<1x512xf32, #tpu.memory_space<vmem>>, vector<1x512xf32>,
    return
  }
  func.func @transform_0(%arg0: i32) -> (i32, i32) {
    %c0_i32 = arith.constant 0 : i32
    %c0_i32_0 = arith.constant 0 : i32
    return %arg0, %c0_i32 : i32, i32
  }
  func.func @transform_1(%arg0: i32) -> (i32, i32) {
    %c0_i32 = arith.constant 0 : i32
    %c0_i32_0 = arith.constant 0 : i32
    return %arg0, %c0_i32 : i32, i32
  }
}

</mosaic_0001>

<bundles_post_ra>
// kernel: tpu_custom_call.1
= control target key start
LH: loop header
LB: loop body
LE: loop exit
PB: predicated region body
PF: predicated region fallthrough
CT: control target
= control target key end

     0   :  { %6 = vsyncpa [#allocation3], 0  ;;  %s116_s0 = inlined_call_operand.hbm [shape: f32[1,512], index: 0, kind: input, shape index: {}]   ;;  %s117_s1 = inlined_call_operand.hbm [shape: f32[1,512], index: 1, kind: output, shape index: {}]  }
   0x1   :  { %7 = vsyncpa [#allocation4], 0  ;;  %s98_s6 = smov [#allocation2]  }
   0x2   :  { %s14_s7 = sshll.u32 %s98_s6, 4  ;;  %s15_s7 = int_to_ptr.vmem [resolvable:$true] %s14_s7 }
   0x3   :  { %s62_s8 = scalar_lea.vmem %s15_s7, 64  ;;  %p67_p1 = scmp.lt.s32.totalorder %s15_s7, %s15_s7 }
   0x4   :  { %p63_p0 = scmp.ne.s32.totalorder %s15_s7, %s62_s8  ;;  %p68_p2 = scmp.lt.s32.totalorder %s62_s8, %s62_s8 }
   0x6   :  { %p69_p3 = por %p68_p2, %p67_p1 }
   0x8   :  { %p70_p4 = pnand %p69_p3, %p63_p0 }
   0xa   :  { %73 = shalt.err (!%p70_p4)
}
   0xb   :  { %17 = dma.hbm_to_vmem [thread:$0]  %s116_s0, 64, %s15_s7, [#allocation3]  }
   0xc   :  { %94 = dma.done.wait [#allocation3], 64  }
   0xd   :  { %95 = vsyncadd [#allocation3], 4294967232  ;;  %v21_v0 = vld [vmem:[#allocation2] sm:$0xf]  ;;  %v30_v6 = vlaneseq  ;;  %s99_s11 = smov [#allocation5]  }
   0xe   :  { %v22_v1 = vmul.f32 %v21_v0, %v21_v0  ;;  %v26_v5 = vmul.f32 0.5, %v21_v0  ;;  %s41_s12 = sshll.u32 %s99_s11, 4  ;;  %s42_s12 = int_to_ptr.vmem [resolvable:$true] %s41_s12 }
   0xf   :  { %vm32_vm0 = vcmp.lt.s32.totalorder %v30_v6, 512  ;;  %s74_s13 = scalar_lea.vmem %s42_s12, 64  ;;  %p79_p6 = scmp.lt.s32.totalorder %s42_s12, %s42_s12 }
  0x10   :  { %v23_v2 = vmul.f32 0.035677407, %v22_v1  ;;  %p75_p5 = scmp.ne.s32.totalorder %s42_s12, %s74_s13  ;;  %p80_p7 = scmp.lt.s32.totalorder %s74_s13, %s74_s13 }
  0x12   :  { %v24_v3 = vadd.f32 0.7978846, %v23_v2  ;;  %p81_p8 = por %p80_p7, %p79_p6 }
  0x14   :  { %v25_v4 = vmul.f32 %v24_v3, %v21_v0  ;;  %p82_p9 = pnand %p81_p8, %p75_p5 }
  0x16   :  { %52 = vtanh.f32 %v25_v4 }
  0x23   :  { %v53_v7 = vpop.eup %52 }
  0x24   :  { %v28_v8 = vmul.f32 %v53_v7, %v26_v5 }
  0x26   :  { %v29_v9 = vadd.f32 %v28_v8, %v26_v5 }
  0x28   :  { %34 = vst.msk [vmem:[#allocation5] sm:$0xf] %vm32_vm0, %v29_v9 }
  0x29   :  { %85 = shalt.err (!%p82_p9)
}
  0x2a   :  { %44 = dma.vmem_to_hbm [thread:$0]  %s42_s12, 64, %s117_s1, [#allocation4]  }
  0x2b   :  { %96 = dma.done.wait [#allocation4], 64  }
  0x2c   :  { %97 = vsyncadd [#allocation4], 4294967232 }
  0x2d   :  { %48 = vsyncpa [#allocation3], 1 }
  0x2e   :  { %49 = vsyncpa [#allocation4], 1 }

</bundles_post_ra>
